<compile_context>
chip_gen: v7x
topology: tpu7x:2x2x1
jax: 0.10.0
libtpu: 0.0.40
codegen_flags: <defaults>
</compile_context>

<pallas_src>
import jax
import jax.numpy as jnp
from jax.experimental import pallas as pl
from jax.experimental.pallas import tpu as pltpu

N1, N2, N3, N_OUT = 256, 512, 256, 128
SUB = 16        # sublane granularity for the batch tile (bf16 packing = 16 rows)
MAX_TB = 512    # max batch-tile rows per grid step (~5 MiB peak VMEM, safe on v5e+)


def _mlp_kernel(x_ref, w1_ref, b1_ref, w2_ref, b2_ref,
                w3_ref, b3_ref, w4_ref, b4_ref, o_ref):
    """One batch tile of the fused 4-layer MLP.

    All matmuls hit the MXU in bf16 with f32 accumulation; bias-add + ReLU run
    on the VPU in f32. Activations are kept as values (no scratch round-trips).
    """
    x = x_ref[...].astype(jnp.bfloat16)            # VPU cast, hidden under MXU

    h = jnp.dot(x, w1_ref[...], preferred_element_type=jnp.float32)
    h = jnp.maximum(h + b1_ref[...], 0.0).astype(jnp.bfloat16)

    h = jnp.dot(h, w2_ref[...], preferred_element_type=jnp.float32)
    h = jnp.maximum(h + b2_ref[...], 0.0).astype(jnp.bfloat16)

    h = jnp.dot(h, w3_ref[...], preferred_element_type=jnp.float32)
    h = jnp.maximum(h + b3_ref[...], 0.0).astype(jnp.bfloat16)

    h = jnp.dot(h, w4_ref[...], preferred_element_type=jnp.float32)
    o_ref[...] = (h + b4_ref[...]).astype(o_ref.dtype)


def _round_up(n, m):
    return ((n + m - 1) // m) * m


def prepare_params(params):
    """One-time conversion of f32 params to the kernel's layout/dtypes.

    Weights -> bf16 (native MXU rate, half the HBM/VMEM footprint); biases stay
    f32 for the accumulate path. Call once and reuse for every forward.
    """
    return dict(
        w1=params["w1"].astype(jnp.bfloat16), b1=params["b1"],
        w2=params["w2"].astype(jnp.bfloat16), b2=params["b2"],
        w3=params["w3"].astype(jnp.bfloat16), b3=params["b3"],
        w4=params["w4"].astype(jnp.bfloat16), b4=params["b4"],
    )


def net_forward(x, prepped):
    """x: [B, input_size] float32.  prepped: output of prepare_params().

    Weights are stored [in_features, out_features] so the kernel computes
    y = x @ W + b (equivalent to PyTorch's x @ W.T + b with W = [out, in]).
    """
    B, in_features = x.shape

    # Batch tiling: pick the largest tile <= MAX_TB, but force >=2 grid steps
    # once the batch is big enough so both v7x TensorCores get work.
    b_pad = _round_up(B, SUB)
    if b_pad >= 2 * SUB:
        tb = min(MAX_TB, _round_up(b_pad // 2, SUB))
    else:
        tb = b_pad
    b_pad = _round_up(b_pad, tb)
    grid = (b_pad // tb,)

    xp = x if b_pad == B else jnp.pad(x, ((0, b_pad - B), (0, 0)))

    operands = (xp,
                prepped["w1"], prepped["b1"],
                prepped["w2"], prepped["b2"],
                prepped["w3"], prepped["b3"],
                prepped["w4"], prepped["b4"])

    # x: batch-tiled, full K dim (full-dim block => exempt from 128-lane rule).
    in_specs = [pl.BlockSpec((tb, in_features), lambda i: (i, 0))]
    # Weights/biases: full-array blocks, constant index_map -> loaded once,
    # VMEM-resident across all batch tiles (no re-DMA per tile).
    for op in operands[1:]:
        in_specs.append(pl.BlockSpec(op.shape, lambda i: (0, 0)))
    out_spec = pl.BlockSpec((tb, N_OUT), lambda i: (i, 0))

    flops = 2 * b_pad * (in_features * N1 + N1 * N2 + N2 * N3 + N3 * N_OUT)
    bytes_accessed = (sum(int(op.size) * op.dtype.itemsize for op in operands)
                      + b_pad * N_OUT * 4)

    out = pl.pallas_call(
        _mlp_kernel,
        out_shape=jax.ShapeDtypeStruct((b_pad, N_OUT), jnp.float32),
        grid=grid,
        in_specs=in_specs,
        out_specs=out_spec,
        compiler_params=pltpu.CompilerParams(
            dimension_semantics=("parallel",)),
        cost_estimate=pl.CostEstimate(
            flops=flops, transcendentals=0, bytes_accessed=bytes_accessed),
    )(*operands)

    return out[:B]


def init_params(key, input_size):
    """Deterministic init mimicking nn.Linear's U(-1/sqrt(fan_in), 1/sqrt(fan_in))."""
    def linear(key, fan_in, fan_out):
        kw, kb = jax.random.split(key)
        bound = 1.0 / jnp.sqrt(fan_in)
        w = jax.random.uniform(kw, (fan_in, fan_out), jnp.float32, -bound, bound)
        b = jax.random.uniform(kb, (1, fan_out), jnp.float32, -bound, bound)
        return w, b

    k1, k2, k3, k4 = jax.random.split(key, 4)
    w1, b1 = linear(k1, input_size, N1)
    w2, b2 = linear(k2, N1, N2)
    w3, b3 = linear(k3, N2, N3)
    w4, b4 = linear(k4, N3, N_OUT)
    return dict(w1=w1, b1=b1, w2=w2, b2=b2, w3=w3, b3=b3, w4=w4, b4=b4)


def net_forward_ref(x, p):
    """Pure-JAX reference using the same bf16-weights / f32-accumulation recipe.

    Note: intermediate activations are bf16 between layers, so results differ
    from a pure-f32 PyTorch run at the ~1e-2 level by design.
    """
    def lin(h, w, b):
        return jnp.dot(h.astype(jnp.bfloat16), w.astype(jnp.bfloat16),
                       preferred_element_type=jnp.float32) + b
    h = jnp.maximum(lin(x, p["w1"], p["b1"]), 0.0)
    h = jnp.maximum(lin(h, p["w2"], p["b2"]), 0.0)
    h = jnp.maximum(lin(h, p["w3"], p["b3"]), 0.0)
    return lin(h, p["w4"], p["b4"])


if __name__ == "__main__":
    B, INPUT_SIZE = 8, 64
    key = jax.random.PRNGKey(0)
    kx, kp = jax.random.split(key)

    x = jax.random.normal(kx, (B, INPUT_SIZE), dtype=jnp.float32)
    params = init_params(kp, INPUT_SIZE)
    prepped = prepare_params(params)          # one-time weight conversion

    out = net_forward(x, prepped)
    out = jax.block_until_ready(out)

    ref = net_forward_ref(x, params)
    assert out.shape == (B, N_OUT)
    assert jnp.allclose(out, ref, atol=2e-2, rtol=2e-2)

    print("KERNEL_OK")
</pallas_src>

<mosaic_0001>
module attributes {stable_mosaic.version = 11 : i64} {
  func.func @_mlp_kernel(%arg0: i32, %arg1: memref<16x64xf32, #tpu.memory_space<vmem>>, %arg2: memref<64x256xbf16, #tpu.memory_space<vmem>>, %arg3: memref<1x256xf32, #tpu.memory_space<vmem>>, %arg4: memref<256x512xbf16, #tpu.memory_space<vmem>>, %arg5: memref<1x512xf32, #tpu.memory_space<vmem>>, %arg6: memref<512x256xbf16, #tpu.memory_space<vmem>>, %arg7: memref<1x256xf32, #tpu.memory_space<vmem>>, %arg8: memref<256x128xbf16, #tpu.memory_space<vmem>>, %arg9: memref<1x128xf32, #tpu.memory_space<vmem>>, %arg10: memref<16x128xf32, #tpu.memory_space<vmem>>) attributes {dimension_semantics = [#tpu.dimension_semantics<parallel>], iteration_bounds = array<i64: 1>, scalar_prefetch = 0 : i64, scratch_operands = 0 : i64, tpu.core_type = #tpu.core_type<tc>, window_params = [{transform_indices = @transform_0, window_bounds = array<i64: 16, 64>}, {pipeline_mode = #tpu.pipeline_mode<synchronous>, transform_indices = @transform_1, window_bounds = array<i64: 64, 256>}, {pipeline_mode = #tpu.pipeline_mode<synchronous>, transform_indices = @transform_2, window_bounds = array<i64: 1, 256>}, {pipeline_mode = #tpu.pipeline_mode<synchronous>, transform_indices = @transform_3, window_bounds = array<i64: 256, 512>}, {pipeline_mode = #tpu.pipeline_mode<synchronous>, transform_indices = @transform_4, window_bounds = array<i64: 1, 512>}, {pipeline_mode = #tpu.pipeline_mode<synchronous>, transform_indices = @transform_5, window_bounds = array<i64: 512, 256>}, {pipeline_mode = #tpu.pipeline_mode<synchronous>, transform_indices = @transform_6, window_bounds = array<i64: 1, 256>}, {pipeline_mode = #tpu.pipeline_mode<synchronous>, transform_indices = @transform_7, window_bounds = array<i64: 256, 128>}, {pipeline_mode = #tpu.pipeline_mode<synchronous>, transform_indices = @transform_8, window_bounds = array<i64: 1, 128>}, {transform_indices = @transform_9, window_bounds = array<i64: 16, 128>}]} {
    %c0 = arith.constant 0 : index
    %c0_0 = arith.constant 0 : index
    %0 = vector.load %arg1[%c0, %c0_0] : memref<16x64xf32, #tpu.memory_space<vmem>>, vector<16x64xf32>
    %1 = arith.truncf %0 : vector<16x64xf32> to vector<16x64xbf16>
    %c0_1 = arith.constant 0 : index
    %c0_2 = arith.constant 0 : index
    %2 = vector.load %arg2[%c0_1, %c0_2] : memref<64x256xbf16, #tpu.memory_space<vmem>>, vector<64x256xbf16>
    %cst = arith.constant dense<0.000000e+00> : vector<16x256xf32>
    %3 = tpu.matmul %1, %2, %cst {dimension_numbers = #tpu.dot_dimension_numbers<[1], [0], [0], [1], [0, 0, 1, 1], [], []>} : vector<16x64xbf16>, vector<64x256xbf16>, vector<16x256xf32> -> vector<16x256xf32>
    %c0_3 = arith.constant 0 : index
    %c0_4 = arith.constant 0 : index
    %4 = vector.load %arg3[%c0_3, %c0_4] : memref<1x256xf32, #tpu.memory_space<vmem>>, vector<1x256xf32>
    %5 = vector.broadcast %4 : vector<1x256xf32> to vector<16x256xf32>
    %6 = arith.addf %3, %5 : vector<16x256xf32>
    %cst_5 = arith.constant 0.000000e+00 : f32
    %7 = vector.broadcast %cst_5 : f32 to vector<16x256xf32>
    %8 = arith.maximumf %6, %7 : vector<16x256xf32>
    %9 = arith.truncf %8 : vector<16x256xf32> to vector<16x256xbf16>
    %c0_6 = arith.constant 0 : index
    %c0_7 = arith.constant 0 : index
    %10 = vector.load %arg4[%c0_6, %c0_7] : memref<256x512xbf16, #tpu.memory_space<vmem>>, vector<256x512xbf16>
    %cst_8 = arith.constant dense<0.000000e+00> : vector<16x512xf32>
    %11 = tpu.matmul %9, %10, %cst_8 {dimension_numbers = #tpu.dot_dimension_numbers<[1], [0], [0], [1], [0, 0, 1, 1], [], []>} : vector<16x256xbf16>, vector<256x512xbf16>, vector<16x512xf32> -> vector<16x512xf32>
    %c0_9 = arith.constant 0 : index
    %c0_10 = arith.constant 0 : index
    %12 = vector.load %arg5[%c0_9, %c0_10] : memref<1x512xf32, #tpu.memory_space<vmem>>, vector<1x512xf32>
    %13 = vector.broadcast %12 : vector<1x512xf32> to vector<16x512xf32>
    %14 = arith.addf %11, %13 : vector<16x512xf32>
    %cst_11 = arith.constant 0.000000e+00 : f32
    %15 = vector.broadcast %cst_11 : f32 to vector<16x512xf32>
    %16 = arith.maximumf %14, %15 : vector<16x512xf32>
    %17 = arith.truncf %16 : vector<16x512xf32> to vector<16x512xbf16>
    %c0_12 = arith.constant 0 : index
    %c0_13 = arith.constant 0 : index
    %18 = vector.load %arg6[%c0_12, %c0_13] : memref<512x256xbf16, #tpu.memory_space<vmem>>, vector<512x256xbf16>
    %cst_14 = arith.constant dense<0.000000e+00> : vector<16x256xf32>
    %19 = tpu.matmul %17, %18, %cst_14 {dimension_numbers = #tpu.dot_dimension_numbers<[1], [0], [0], [1], [0, 0, 1, 1], [], []>} : vector<16x512xbf16>, vector<512x256xbf16>, vector<16x256xf32> -> vector<16x256xf32>
    %c0_15 = arith.constant 0 : index
    %c0_16 = arith.constant 0 : index
    %20 = vector.load %arg7[%c0_15, %c0_16] : memref<1x256xf32, #tpu.memory_space<vmem>>, vector<1x256xf32>
    %21 = vector.broadcast %20 : vector<1x256xf32> to vector<16x256xf32>
    %22 = arith.addf %19, %21 : vector<16x256xf32>
    %cst_17 = arith.constant 0.000000e+00 : f32
    %23 = vector.broadcast %cst_17 : f32 to vector<16x256xf32>
    %24 = arith.maximumf %22, %23 : vector<16x256xf32>
    %25 = arith.truncf %24 : vector<16x256xf32> to vector<16x256xbf16>
    %c0_18 = arith.constant 0 : index
    %c0_19 = arith.constant 0 : index
    %26 = vector.load %arg8[%c0_18, %c0_19] : memref<256x128xbf16, #tpu.memory_space<vmem>>, vector<256x128xbf16>
    %cst_20 = arith.constant dense<0.000000e+00> : vector<16x128xf32>
    %27 = tpu.matmul %25, %26, %cst_20 {dimension_numbers = #tpu.dot_dimension_numbers<[1], [0], [0], [1], [0, 0, 1, 1], [], []>} : vector<16x256xbf16>, vector<256x128xbf16>, vector<16x128xf32> -> vector<16x128xf32>
    %c0_21 = arith.constant 0 : index
    %c0_22 = arith.constant 0 : index
    %28 = vector.load %arg9[%c0_21, %c0_22] : memref<1x128xf32, #tpu.memory_space<vmem>>, vector<1x128xf32>
    %29 = vector.broadcast %28 : vector<1x128xf32> to vector<16x128xf32>
    %30 = arith.addf %27, %29 : vector<16x128xf32>
    %c0_23 = arith.constant 0 : index
    %c0_24 = arith.constant 0 : index
    %31 = vector.load %arg10[%c0_23, %c0_24] : memref<16x128xf32, #tpu.memory_space<vmem>>, vector<16x128xf32>
    tpu.vector_store %arg10[%c0_23, %c0_24], %30 {strides = array<i32>} : memref<16x128xf32, #tpu.memory_space<vmem>>, vector<16x128xf32>,
    return
  }
  func.func @transform_0(%arg0: i32) -> (i32, i32) {
    %c0_i32 = arith.constant 0 : i32
    %c0_i32_0 = arith.constant 0 : i32
    return %arg0, %c0_i32 : i32, i32
  }
  func.func @transform_1(%arg0: i32) -> (i32, i32) {
    %c0_i32 = arith.constant 0 : i32
    %c0_i32_0 = arith.constant 0 : i32
    %c0_i32_1 = arith.constant 0 : i32
    return %c0_i32, %c0_i32_0 : i32, i32
  }
  func.func @transform_2(%arg0: i32) -> (i32, i32) {
    %c0_i32 = arith.constant 0 : i32
    %c0_i32_0 = arith.constant 0 : i32
    %c0_i32_1 = arith.constant 0 : i32
    return %c0_i32, %c0_i32_0 : i32, i32
  }
  func.func @transform_3(%arg0: i32) -> (i32, i32) {
    %c0_i32 = arith.constant 0 : i32
    %c0_i32_0 = arith.constant 0 : i32
    %c0_i32_1 = arith.constant 0 : i32
    return %c0_i32, %c0_i32_0 : i32, i32
  }
  func.func @transform_4(%arg0: i32) -> (i32, i32) {
    %c0_i32 = arith.constant 0 : i32
    %c0_i32_0 = arith.constant 0 : i32
    %c0_i32_1 = arith.constant 0 : i32
    return %c0_i32, %c0_i32_0 : i32, i32
  }
  func.func @transform_5(%arg0: i32) -> (i32, i32) {
    %c0_i32 = arith.constant 0 : i32
    %c0_i32_0 = arith.constant 0 : i32
    %c0_i32_1 = arith.constant 0 : i32
    return %c0_i32, %c0_i32_0 : i32, i32
  }
  func.func @transform_6(%arg0: i32) -> (i32, i32) {
    %c0_i32 = arith.constant 0 : i32
    %c0_i32_0 = arith.constant 0 : i32
    %c0_i32_1 = arith.constant 0 : i32
    return %c0_i32, %c0_i32_0 : i32, i32
  }
  func.func @transform_7(%arg0: i32) -> (i32, i32) {
    %c0_i32 = arith.constant 0 : i32
    %c0_i32_0 = arith.constant 0 : i32
    %c0_i32_1 = arith.constant 0 : i32
    return %c0_i32, %c0_i32_0 : i32, i32
  }
  func.func @transform_8(%arg0: i32) -> (i32, i32) {
    %c0_i32 = arith.constant 0 : i32
    %c0_i32_0 = arith.constant 0 : i32
    %c0_i32_1 = arith.constant 0 : i32
    return %c0_i32, %c0_i32_0 : i32, i32
  }
  func.func @transform_9(%arg0: i32) -> (i32, i32) {
    %c0_i32 = arith.constant 0 : i32
    %c0_i32_0 = arith.constant 0 : i32
    return %arg0, %c0_i32 : i32, i32
  }
}

</mosaic_0001>

<bundles_post_ra>
// kernel: tpu_custom_call.1
= control target key start
LH: loop header
LB: loop body
LE: loop exit
PB: predicated region body
PF: predicated region fallthrough
CT: control target
= control target key end

     0   :  { %14 = vsyncpa [#allocation3], 0  ;;  %s2163_s0 = inlined_call_operand.hbm [shape: f32[16,64], index: 0, kind: input, shape index: {}]   ;;  %s2164_s1 = inlined_call_operand.hbm [shape: bf16[64,256], index: 1, kind: input, shape index: {}]   ;;  %s2165_s2 = inlined_call_operand.vmem [shape: f32[1,256], index: 2, kind: input, shape index: {}]   ;;  %s2166_s3 = inlined_call_operand.hbm [shape: bf16[256,512], index: 3, kind: input, shape index: {}]   ;;  %s2167_s4 = inlined_call_operand.vmem [shape: f32[1,512], index: 4, kind: input, shape index: {}]   ;;  %s2168_s5 = inlined_call_operand.hbm [shape: bf16[512,256], index: 5, kind: input, shape index: {}]   ;;  %s2169_s6 = inlined_call_operand.vmem [shape: f32[1,256], index: 6, kind: input, shape index: {}]   ;;  %s2170_s7 = inlined_call_operand.hbm [shape: bf16[256,128], index: 7, kind: input, shape index: {}]   ;;  %s2171_s8 = inlined_call_operand.vmem [shape: f32[1,128], index: 8, kind: input, shape index: {}]   ;;  %s2172_s9 = inlined_call_operand.hbm [shape: f32[16,128], index: 9, kind: output, shape index: {}]  }
   0x1   :  { %15 = vsyncpa [#allocation6], 0 }
   0x2   :  { %16 = vsyncpa [#allocation9], 0 }
   0x3   :  { %17 = vsyncpa [#allocation4], 0  ;;  %s1964_s30 = smov [#allocation5]   ;;  %s1965_s11 = smov [#allocation8]  }
   0x4   :  { %s35_s10 = sshll.u32 %s1964_s30, 4  ;;  %s63_s12 = sshll.u32 %s1965_s11, 4  ;;  %s36_s10 = int_to_ptr.vmem [resolvable:$true] %s35_s10  ;;  %s2027_s12 = int_to_ptr.vmem [resolvable:$true] %s63_s12 }
   0x5   :  { %s1824_s15 = scalar_lea.hbm %s2164_s1, 1024 }
   0x6   :  { %p1825_p0 = scmp.ne.s32.totalorder %s2164_s1, %s1824_s15  ;;  %p1828_p1 = scmp.lt.u32.totalorder %s1824_s15, %s2164_s1 }
   0x8   :  { %p1830_p2 = pnand %p1828_p1, %p1825_p0 }
   0xa   :  { %1833 = shalt.err (!%p1830_p2)
}
   0xb   :  { %s1834_s20 = scalar_lea.vmem %s36_s10, 1024  ;;  %p1839_p4 = scmp.lt.s32.totalorder %s36_s10, %s36_s10 }
   0xc   :  { %p1835_p3 = scmp.ne.s32.totalorder %s36_s10, %s1834_s20  ;;  %p1840_p5 = scmp.lt.s32.totalorder %s1834_s20, %s1834_s20 }
   0xe   :  { %p1841_p6 = por %p1840_p5, %p1839_p4 }
  0x10   :  { %p1842_p7 = pnand %p1841_p6, %p1835_p3 }
  0x12   :  { %1845 = shalt.err (!%p1842_p7)
}
  0x13   :  { %s1966_s21 = smov 128   ;;  %s1967_s22 = smov 8  }
  0x14   :  { %41 = dma.hbm_to_vmem [thread:$0]  %s2164_s1, 1024, %s36_s10, [#allocation6], %s1966_s21, %s1966_s21, %s1967_s22  }
  0x15   :  { %s1846_s27 = scalar_lea.hbm %s2168_s5, 8192 }
  0x16   :  { %p1847_p8 = scmp.ne.s32.totalorder %s2168_s5, %s1846_s27  ;;  %p1850_p9 = scmp.lt.u32.totalorder %s1846_s27, %s2168_s5 }
  0x18   :  { %p1852_p10 = pnand %p1850_p9, %p1847_p8 }
  0x1a   :  { %1855 = shalt.err (!%p1852_p10)
}
  0x1b   :  { %s1856_s13 = scalar_lea.vmem %s2027_s12, 8192  ;;  %p1861_p12 = scmp.lt.s32.totalorder %s2027_s12, %s2027_s12 }
  0x1c   :  { %p1857_p11 = scmp.ne.s32.totalorder %s2027_s12, %s1856_s13  ;;  %p1862_p13 = scmp.lt.s32.totalorder %s1856_s13, %s1856_s13 }
  0x1e   :  { %p1863_p0 = por %p1862_p13, %p1861_p12 }
  0x20   :  { %p1864_p1 = pnand %p1863_p0, %p1857_p11 }
  0x22   :  { %1867 = shalt.err (!%p1864_p1)
}
  0x23   :  { %69 = dma.hbm_to_vmem [thread:$0]  %s2168_s5, 8192, %s2027_s12, [#allocation9], %s1966_s21, %s1966_s21, %s1967_s22  }
  0x24   :  { %s1968_s14 = smov [#allocation2]   ;;  %s1969_s16 = smov [#allocation7]  }
  0x25   :  { %s23_s15 = sshll.u32 %s1968_s14, 4  ;;  %s49_s17 = sshll.u32 %s1969_s16, 4  ;;  %s24_s15 = int_to_ptr.vmem [resolvable:$true] %s23_s15  ;;  %s2064_s17 = int_to_ptr.vmem [resolvable:$true] %s49_s17 }
  0x26   :  { %s1868_s20 = scalar_lea.hbm %s2163_s0, 256 }
  0x27   :  { %p1869_p2 = scmp.ne.s32.totalorder %s2163_s0, %s1868_s20  ;;  %p1872_p3 = scmp.lt.u32.totalorder %s1868_s20, %s2163_s0 }
  0x29   :  { %p1874_p4 = pnand %p1872_p3, %p1869_p2 }
  0x2b   :  { %1877 = shalt.err (!%p1874_p4)
}
  0x2c   :  { %s1878_s5 = scalar_lea.vmem %s24_s15, 256  ;;  %p1883_p6 = scmp.lt.s32.totalorder %s24_s15, %s24_s15 }
  0x2d   :  { %p1879_p5 = scmp.ne.s32.totalorder %s24_s15, %s1878_s5  ;;  %p1884_p7 = scmp.lt.s32.totalorder %s1878_s5, %s1878_s5 }
  0x2f   :  { %p1885_p8 = por %p1884_p7, %p1883_p6 }
  0x31   :  { %p1886_p9 = pnand %p1885_p8, %p1879_p5 }
  0x33   :  { %1889 = shalt.err (!%p1886_p9)
}
  0x34   :  { %29 = dma.hbm_to_vmem [thread:$0]  %s2163_s0, 256, %s24_s15, [#allocation3], %s1966_s21, %s1966_s21, %s1967_s22  }
  0x35   :  { %s1890_s30 = scalar_lea.hbm %s2166_s3, 8192 }
  0x36   :  { %p1891_p10 = scmp.ne.s32.totalorder %s2166_s3, %s1890_s30  ;;  %p1894_p11 = scmp.lt.u32.totalorder %s1890_s30, %s2166_s3 }
  0x38   :  { %p1896_p12 = pnand %p1894_p11, %p1891_p10 }
  0x3a   :  { %1899 = shalt.err (!%p1896_p12)
}
  0x3b   :  { %s1900_s14 = scalar_lea.vmem %s2064_s17, 8192  ;;  %p1905_p0 = scmp.lt.s32.totalorder %s2064_s17, %s2064_s17 }
  0x3c   :  { %p1901_p13 = scmp.ne.s32.totalorder %s2064_s17, %s1900_s14  ;;  %p1906_p1 = scmp.lt.s32.totalorder %s1900_s14, %s1900_s14 }
  0x3e   :  { %p1907_p2 = por %p1906_p1, %p1905_p0 }
  0x40   :  { %p1908_p3 = pnand %p1907_p2, %p1901_p13 }
  0x42   :  { %1911 = shalt.err (!%p1908_p3)
}
  0x43   :  { %s1970_s0 = smov 256   ;;  %s1971_s15 = smov 16  }
  0x44   :  { %55 = dma.hbm_to_vmem [thread:$0]  %s2166_s3, 8192, %s2064_s17, [#allocation6], %s1970_s0, %s1970_s0, %s1971_s15  }
  0x45   :  { %s1972_s19 = smov [#allocation10]   ;;  %s1912_s25 = scalar_lea.hbm %s2170_s7, 2048 }
  0x46   :  { %s77_s20 = sshll.u32 %s1972_s19, 4  ;;  %p1913_p4 = scmp.ne.s32.totalorder %s2170_s7, %s1912_s25  ;;  %s78_s20 = int_to_ptr.vmem [resolvable:$true] %s77_s20 }
  0x47   :  { %p1916_p5 = scmp.lt.u32.totalorder %s1912_s25, %s2170_s7 }
  0x49   :  { %p1918_p6 = pnand %p1916_p5, %p1913_p4 }
  0x4b   :  { %1921 = shalt.err (!%p1918_p6)
}
  0x4c   :  { %s1922_s28 = scalar_lea.vmem %s78_s20, 2048  ;;  %p1927_p8 = scmp.lt.s32.totalorder %s78_s20, %s78_s20 }
  0x4d   :  { %p1923_p7 = scmp.ne.s32.totalorder %s78_s20, %s1922_s28  ;;  %p1928_p9 = scmp.lt.s32.totalorder %s1922_s28, %s1922_s28 }
  0x4f   :  { %p1929_p10 = por %p1928_p9, %p1927_p8 }
  0x51   :  { %p1930_p11 = pnand %p1929_p10, %p1923_p7 }
  0x53   :  { %1933 = shalt.err (!%p1930_p11)
}
  0x54   :  { %s1973_s3 = smov 64   ;;  %s1974_s17 = smov 4  }
  0x55   :  { %83 = dma.hbm_to_vmem [thread:$0]  %s2170_s7, 2048, %s78_s20, [#allocation9], %s1973_s3, %s1973_s3, %s1974_s17  }
  0x56   :  { %1956 = dma.done.wait [#allocation3], 256  }
  0x57   :  { %1957 = vsyncadd [#allocation3], 4294967040 }
  0x58   :  { %1958 = dma.done.wait [#allocation6], 9216  }
  0x59   :  { %1959 = vsyncadd [#allocation6], 4294958080 }
  0x5a   :  { %1960 = dma.done.wait [#allocation9], 10240  }
  0x5b   :  { %1961 = vsyncadd [#allocation9], 4294957056  ;;  %v1975_v0 = vmov 0   ;;  %v1604_v1 = vld [vmem:[#allocation5 + $0x4] ss:$8 sps:$4 sm:$0xff]   ;;  %v102_v12 = vld [vmem:[#allocation2] sm:$0xff] }
  0x5c   :  { %201 = vmatprep.mubr.bf16.mxu1 %v1975_v0  ;;  %v1606_v2 = vld [vmem:[#allocation5] ss:$8 sps:$4 sm:$0xff]   ;;  %169 = vmatprep.subr.bf16.mxu1 %v1604_v1  ;;  %v1607_v3 = vld [vmem:[#allocation5 + $0x14] ss:$8 sps:$4 sm:$0xff]   ;;  %v1609_v4 = vld [vmem:[#allocation5 + $0x10] ss:$8 sps:$4 sm:$0xff]  }
  0x5d   :  { %170 = vmatpush1.bf16.msra.mxu1 %v1606_v2  ;;  %v1610_v5 = vld [vmem:[#allocation5 + $0x24] ss:$8 sps:$4 sm:$0xff]   ;;  %v1612_v6 = vld [vmem:[#allocation5 + $0x20] ss:$8 sps:$4 sm:$0xff]   ;;  %v1613_v9 = vld [vmem:[#allocation5 + $0x34] ss:$8 sps:$4 sm:$0xff]   ;;  %v115_v2 = vlaneseq }
  0x5e   :  { %171 = vmatprep.subr.bf16.mxu1 %v1607_v3  ;;  %v1616_v7 = vld [vmem:[#allocation7 + $0x4] ss:$16 sps:$4 sm:$0xff]   ;;  %v1618_v8 = vld [vmem:[#allocation7] ss:$16 sps:$4 sm:$0xff]   ;;  %v103_v15 = vld [vmem:[#allocation2 + $0x8] sm:$0xff]  ;;  %vm165_vm0 = vcmask 523264  }
  0x5f   :  { %624 = vmatprep.subr.bf16.mxu0 %v1616_v7  ;;  %v1619_v10 = vld [vmem:[#allocation7 + $0x24] ss:$16 sps:$4 sm:$0xff]   ;;  %v1615_v11 = vld [vmem:[#allocation5 + $0x30] ss:$8 sps:$4 sm:$0xff]   ;;  %v104_v17 = vpack.c.bf16 %v103_v15, %v102_v12  ;;  %v1666_v44 = vld [vmem:[#allocation7 + $0xc] ss:$16 sps:$4 sm:$0xff]  }
  0x60   :  { %625 = vmatpush1.bf16.msra.mxu0 %v1618_v8  ;;  %v1621_v13 = vld [vmem:[#allocation7 + $0x20] ss:$16 sps:$4 sm:$0xff]   ;;  %v1622_v14 = vld [vmem:[#allocation7 + $0x44] ss:$16 sps:$4 sm:$0xff]   ;;  %s1976_s14 = smov [#allocation11]  }
  0x61   :  { %172 = vmatpush1.bf16.msra.mxu1 %v1609_v4  ;;  %626 = vmatprep.subr.bf16.mxu0 %v1619_v10  ;;  %v1624_v16 = vld [vmem:[#allocation7 + $0x40] ss:$16 sps:$4 sm:$0xff]   ;;  %v1625_v18 = vld [vmem:[#allocation7 + $0x64] ss:$16 sps:$4 sm:$0xff]   ;;  %s1393_s0 = sshll.u32 %s1976_s14, 4  ;;  %s1394_s0 = int_to_ptr.vmem [resolvable:$true] %s1393_s0 }
  0x62   :  { %173 = vmatprep.subr.bf16.mxu1 %v1610_v5  ;;  %v1627_v19 = vld [vmem:[#allocation7 + $0x60] ss:$16 sps:$4 sm:$0xff]   ;;  %v1628_v20 = vld [vmem:[#allocation7 + $0x84] ss:$16 sps:$4 sm:$0xff]   ;;  %v2110_v5 = vshrl.u32 %v115_v2, 7  ;;  %s1934_s15 = scalar_lea.vmem %s1394_s0, 256  ;;  %p1939_p13 = scmp.lt.s32.totalorder %s1394_s0, %s1394_s0 }
  0x63   :  { %v1630_v21 = vld [vmem:[#allocation7 + $0x80] ss:$16 sps:$4 sm:$0xff]   ;;  %v1631_v22 = vld [vmem:[#allocation7 + $0xa4] ss:$16 sps:$4 sm:$0xff]   ;;  %p1935_p12 = scmp.ne.s32.totalorder %s1394_s0, %s1934_s15  ;;  %p1940_p0 = scmp.lt.s32.totalorder %s1934_s15, %s1934_s15 }
  0x64   :  { %627 = vmatpush1.bf16.msra.mxu0 %v1621_v13  ;;  %v1633_v23 = vld [vmem:[#allocation7 + $0xa0] ss:$16 sps:$4 sm:$0xff]   ;;  %v1634_v24 = vld [vmem:[#allocation7 + $0xc4] ss:$16 sps:$4 sm:$0xff]   ;;  %v2113_v8 = vsub.s32 0, %v2110_v5  ;;  %v2119_v10 = vsub.s32 1, %v2110_v5 }
  0x65   :  { %174 = vmatpush1.bf16.msra.mxu1 %v1612_v6  ;;  %628 = vmatprep.subr.bf16.mxu0 %v1622_v14  ;;  %v1636_v25 = vld [vmem:[#allocation7 + $0xc0] ss:$16 sps:$4 sm:$0xff]   ;;  %v1637_v26 = vld [vmem:[#allocation7 + $0xe4] ss:$16 sps:$4 sm:$0xff]   ;;  %p1941_p1 = por %p1940_p0, %p1939_p13 }
  0x66   :  { %175 = vmatprep.subr.bf16.mxu1 %v1613_v9  ;;  %v1639_v27 = vld [vmem:[#allocation7 + $0xe0] ss:$16 sps:$4 sm:$0xff]   ;;  %v1640_v28 = vld [vmem:[#allocation7 + $0x104] ss:$16 sps:$4 sm:$0xff]  }
  0x67   :  { %v1642_v29 = vld [vmem:[#allocation7 + $0x100] ss:$16 sps:$4 sm:$0xff]   ;;  %v1643_v30 = vld [vmem:[#allocation7 + $0x124] ss:$16 sps:$4 sm:$0xff]   ;;  %p1942_p2 = pnand %p1941_p1, %p1935_p12 }
  0x68   :  { %629 = vmatpush1.bf16.msra.mxu0 %v1624_v16  ;;  %v1645_v31 = vld [vmem:[#allocation7 + $0x120] ss:$16 sps:$4 sm:$0xff]   ;;  %v1646_v32 = vld [vmem:[#allocation7 + $0x144] ss:$16 sps:$4 sm:$0xff]  }
  0x69   :  { %176 = vmatpush1.bf16.msra.mxu1 %v1615_v11  ;;  %630 = vmatprep.subr.bf16.mxu0 %v1625_v18  ;;  %v1648_v33 = vld [vmem:[#allocation7 + $0x140] ss:$16 sps:$4 sm:$0xff]   ;;  %v1649_v34 = vld [vmem:[#allocation7 + $0x164] ss:$16 sps:$4 sm:$0xff]  }
  0x6a   :  { %v1651_v35 = vld [vmem:[#allocation7 + $0x160] ss:$16 sps:$4 sm:$0xff]   ;;  %v1652_v36 = vld [vmem:[#allocation7 + $0x184] ss:$16 sps:$4 sm:$0xff]  }
  0x6b   :  { %v1654_v37 = vld [vmem:[#allocation7 + $0x180] ss:$16 sps:$4 sm:$0xff]   ;;  %v1655_v38 = vld [vmem:[#allocation7 + $0x1a4] ss:$16 sps:$4 sm:$0xff]  }
  0x6c   :  { %1415 = vmatmul.mubr.msk.bf16.vlgmr.msra.gmra.mrb[0].mxu1 %vm165_vm0, %v104_v17  ;;  %631 = vmatpush1.bf16.msra.mxu0 %v1627_v19  ;;  %v1657_v39 = vld [vmem:[#allocation7 + $0x1a0] ss:$16 sps:$4 sm:$0xff]   ;;  %v1658_v40 = vld [vmem:[#allocation7 + $0x1c4] ss:$16 sps:$4 sm:$0xff]  }
  0x6d   :  { %632 = vmatprep.subr.bf16.mxu0 %v1628_v20  ;;  %v1660_v41 = vld [vmem:[#allocation7 + $0x1c0] ss:$16 sps:$4 sm:$0xff]   ;;  %v1661_v42 = vld [vmem:[#allocation7 + $0x1e4] ss:$16 sps:$4 sm:$0xff]  }
  0x6e   :  { %v1663_v43 = vld [vmem:[#allocation7 + $0x1e0] ss:$16 sps:$4 sm:$0xff]   ;;  %v1714_v46 = vld [vmem:[#allocation8 + $0x4] ss:$8 sps:$4 sm:$0xff]   ;;  %v1717_v47 = vld [vmem:[#allocation8 + $0x14] ss:$8 sps:$4 sm:$0xff]  }
  0x6f   :  { %v1712_v45 = vld [vmem:[#allocation8] ss:$8 sps:$4 sm:$0xff]   ;;  %1118 = vmatprep.subr.bf16.mxu1 %v1714_v46  ;;  %v1715_v48 = vld [vmem:[#allocation8 + $0x10] ss:$8 sps:$4 sm:$0xff]   ;;  %v1720_v49 = vld [vmem:[#allocation8 + $0x24] ss:$8 sps:$4 sm:$0xff]  }
  0x70   :  { %633 = vmatpush1.bf16.msra.mxu0 %v1630_v21  ;;  %1119 = vmatpush1.bf16.msra.mxu1 %v1712_v45  ;;  %v1718_v50 = vld [vmem:[#allocation8 + $0x20] ss:$8 sps:$4 sm:$0xff]   ;;  %v1723_v51 = vld [vmem:[#allocation8 + $0x34] ss:$8 sps:$4 sm:$0xff]   ;;  %v1721_v52 = vld [vmem:[#allocation8 + $0x30] ss:$8 sps:$4 sm:$0xff]  }
  0x71   :  { %634 = vmatprep.subr.bf16.mxu0 %v1631_v22  ;;  %1120 = vmatprep.subr.bf16.mxu1 %v1717_v47  ;;  %v1726_v53 = vld [vmem:[#allocation8 + $0x44] ss:$8 sps:$4 sm:$0xff]   ;;  %v1724_v54 = vld [vmem:[#allocation8 + $0x40] ss:$8 sps:$4 sm:$0xff]   ;;  %v1729_v55 = vld [vmem:[#allocation8 + $0x54] ss:$8 sps:$4 sm:$0xff]  }
  0x72   :  { %v1727_v56 = vld [vmem:[#allocation8 + $0x50] ss:$8 sps:$4 sm:$0xff]   ;;  %v1732_v57 = vld [vmem:[#allocation8 + $0x64] ss:$8 sps:$4 sm:$0xff]   ;;  %v1730_v58 = vld [vmem:[#allocation8 + $0x60] ss:$8 sps:$4 sm:$0xff]  }
  0x73   :  { %v1735_v59 = vld [vmem:[#allocation8 + $0x74] ss:$8 sps:$4 sm:$0xff]   ;;  %v1733_v60 = vld [vmem:[#allocation8 + $0x70] ss:$8 sps:$4 sm:$0xff]   ;;  %v1738_v61 = vld [vmem:[#allocation8 + $0x84] ss:$8 sps:$4 sm:$0xff]  }
  0x74   :  { %635 = vmatpush1.bf16.msra.mxu0 %v1633_v23  ;;  %1121 = vmatpush1.bf16.msra.mxu1 %v1715_v48  ;;  %v1736_v62 = vld [vmem:[#allocation8 + $0x80] ss:$8 sps:$4 sm:$0xff]   ;;  %v1741_v63 = vld [vmem:[#allocation8 + $0x94] ss:$8 sps:$4 sm:$0xff]   ;;  %v1739_v0 = vld [vmem:[#allocation8 + $0x90] ss:$8 sps:$4 sm:$0xff]  }
  0x75   :  { %636 = vmatprep.subr.bf16.mxu0 %v1634_v24  ;;  %1122 = vmatprep.subr.bf16.mxu1 %v1720_v49  ;;  %v1744_v1 = vld [vmem:[#allocation8 + $0xa4] ss:$8 sps:$4 sm:$0xff]   ;;  %v1742_v3 = vld [vmem:[#allocation8 + $0xa0] ss:$8 sps:$4 sm:$0xff]   ;;  %v1747_v4 = vld [vmem:[#allocation8 + $0xb4] ss:$8 sps:$4 sm:$0xff]  }
  0x76   :  { %v1745_v6 = vld [vmem:[#allocation8 + $0xb0] ss:$8 sps:$4 sm:$0xff]   ;;  %v1750_v7 = vld [vmem:[#allocation8 + $0xc4] ss:$8 sps:$4 sm:$0xff]   ;;  %v1748_v11 = vld [vmem:[#allocation8 + $0xc0] ss:$8 sps:$4 sm:$0xff]  }
  0x77   :  { %v113_v9 = vld [vmem:[%s2165_s2] sm:$0x3]  ;;  %v1753_v12 = vld [vmem:[#allocation8 + $0xd4] ss:$8 sps:$4 sm:$0xff]   ;;  %v1688_v46 = vld [vmem:[#allocation7 + $0x108] ss:$16 sps:$4 sm:$0xff]  }
  0x78   :  { %637 = vmatpush1.bf16.msra.mxu0 %v1636_v25  ;;  %1123 = vmatpush1.bf16.msra.mxu1 %v1718_v50  ;;  %v118_v13 = vrot.slane %v113_v9, %v2113_v8  ;;  %v122_v14 = vrot.slane %v113_v9, %v2119_v10  ;;  %v1751_v15 = vld [vmem:[#allocation8 + $0xd0] ss:$8 sps:$4 sm:$0xff]   ;;  %v1690_v45 = vld [vmem:[#allocation7 + $0x10c] ss:$16 sps:$4 sm:$0xff]   ;;  %v1808_v2 = vld [vmem:[#allocation10 + $0x40] sm:$0xff]  }
  0x79   :  { %638 = vmatprep.subr.bf16.mxu0 %v1637_v26  ;;  %1124 = vmatprep.subr.bf16.mxu1 %v1723_v51  ;;  %v1693_v47 = vld [vmem:[#allocation7 + $0x12c] ss:$16 sps:$4 sm:$0xff]   ;;  %v1691_v48 = vld [vmem:[#allocation7 + $0x128] ss:$16 sps:$4 sm:$0xff]   ;;  %v1813_v9 = vld [vmem:[#allocation10 + $0x10] sm:$0xff]  }
  0x7a   :  { %v1696_v49 = vld [vmem:[#allocation7 + $0x14c] ss:$16 sps:$4 sm:$0xff]   ;;  %v1694_v50 = vld [vmem:[#allocation7 + $0x148] ss:$16 sps:$4 sm:$0xff]  }
  0x7b   :  { %v1699_v51 = vld [vmem:[#allocation7 + $0x16c] ss:$16 sps:$4 sm:$0xff]  }
  0x7c   :  { %639 = vmatpush1.bf16.msra.mxu0 %v1639_v27  ;;  %1125 = vmatpush1.bf16.msra.mxu1 %v1721_v52  ;;  %v1697_v52 = vld [vmem:[#allocation7 + $0x168] ss:$16 sps:$4 sm:$0xff]  }
  0x7d   :  { %640 = vmatprep.subr.bf16.mxu0 %v1640_v28  ;;  %1126 = vmatprep.subr.bf16.mxu1 %v1726_v53  ;;  %v1702_v53 = vld [vmem:[#allocation7 + $0x18c] ss:$16 sps:$4 sm:$0xff]  }
  0x80   :  { %641 = vmatpush1.bf16.msra.mxu0 %v1642_v29  ;;  %1127 = vmatpush1.bf16.msra.mxu1 %v1724_v54  ;;  %v1700_v54 = vld [vmem:[#allocation7 + $0x188] ss:$16 sps:$4 sm:$0xff]  }
  0x81   :  { %642 = vmatprep.subr.bf16.mxu0 %v1643_v30  ;;  %1128 = vmatprep.subr.bf16.mxu1 %v1729_v55  ;;  %v1664_v30 = vld [vmem:[#allocation7 + $0x8] ss:$16 sps:$4 sm:$0xff]   ;;  %v1705_v55 = vld [vmem:[#allocation7 + $0x1ac] ss:$16 sps:$4 sm:$0xff]  }
  0x84   :  { %643 = vmatpush1.bf16.msra.mxu0 %v1645_v31  ;;  %1129 = vmatpush1.bf16.msra.mxu1 %v1727_v56  ;;  %v1669_v31 = vld [vmem:[#allocation7 + $0x2c] ss:$16 sps:$4 sm:$0xff]   ;;  %v1703_v56 = vld [vmem:[#allocation7 + $0x1a8] ss:$16 sps:$4 sm:$0xff]  }
  0x85   :  { %644 = vmatprep.subr.bf16.mxu0 %v1646_v32  ;;  %1130 = vmatprep.subr.bf16.mxu1 %v1732_v57  ;;  %v1667_v32 = vld [vmem:[#allocation7 + $0x28] ss:$16 sps:$4 sm:$0xff]   ;;  %v1708_v57 = vld [vmem:[#allocation7 + $0x1cc] ss:$16 sps:$4 sm:$0xff]  }
  0x88   :  { %645 = vmatpush1.bf16.msra.mxu0 %v1648_v33  ;;  %1131 = vmatpush1.bf16.msra.mxu1 %v1730_v58  ;;  %v1672_v33 = vld [vmem:[#allocation7 + $0x4c] ss:$16 sps:$4 sm:$0xff]   ;;  %v1706_v58 = vld [vmem:[#allocation7 + $0x1c8] ss:$16 sps:$4 sm:$0xff]  }
  0x89   :  { %646 = vmatprep.subr.bf16.mxu0 %v1649_v34  ;;  %1132 = vmatprep.subr.bf16.mxu1 %v1735_v59  ;;  %v1670_v34 = vld [vmem:[#allocation7 + $0x48] ss:$16 sps:$4 sm:$0xff]   ;;  %v1711_v59 = vld [vmem:[#allocation7 + $0x1ec] ss:$16 sps:$4 sm:$0xff]  }
  0x8c   :  { %647 = vmatpush1.bf16.msra.mxu0 %v1651_v35  ;;  %1133 = vmatpush1.bf16.msra.mxu1 %v1733_v60  ;;  %v1675_v35 = vld [vmem:[#allocation7 + $0x6c] ss:$16 sps:$4 sm:$0xff]   ;;  %v1709_v60 = vld [vmem:[#allocation7 + $0x1e8] ss:$16 sps:$4 sm:$0xff]  }
  0x8d   :  { %648 = vmatprep.subr.bf16.mxu0 %v1652_v36  ;;  %1134 = vmatprep.subr.bf16.mxu1 %v1738_v61  ;;  %v1673_v36 = vld [vmem:[#allocation7 + $0x68] ss:$16 sps:$4 sm:$0xff]   ;;  %v1756_v61 = vld [vmem:[#allocation8 + $0xe4] ss:$8 sps:$4 sm:$0xff]  }
  0x90   :  { %649 = vmatpush1.bf16.msra.mxu0 %v1654_v37  ;;  %1135 = vmatpush1.bf16.msra.mxu1 %v1736_v62  ;;  %v1678_v37 = vld [vmem:[#allocation7 + $0x8c] ss:$16 sps:$4 sm:$0xff]   ;;  %v1754_v62 = vld [vmem:[#allocation8 + $0xe0] ss:$8 sps:$4 sm:$0xff]  }
  0x91   :  { %650 = vmatprep.subr.bf16.mxu0 %v1655_v38  ;;  %1136 = vmatprep.subr.bf16.mxu1 %v1741_v63  ;;  %v1676_v38 = vld [vmem:[#allocation7 + $0x88] ss:$16 sps:$4 sm:$0xff]   ;;  %v1759_v63 = vld [vmem:[#allocation8 + $0xf4] ss:$8 sps:$4 sm:$0xff]  }
  0x94   :  { %651 = vmatpush1.bf16.msra.mxu0 %v1657_v39  ;;  %1137 = vmatpush1.bf16.msra.mxu1 %v1739_v0  ;;  %v1681_v39 = vld [vmem:[#allocation7 + $0xac] ss:$16 sps:$4 sm:$0xff]   ;;  %v1757_v0 = vld [vmem:[#allocation8 + $0xf0] ss:$8 sps:$4 sm:$0xff]  }
  0x95   :  { %652 = vmatprep.subr.bf16.mxu0 %v1658_v40  ;;  %1138 = vmatprep.subr.bf16.mxu1 %v1744_v1  ;;  %v1679_v40 = vld [vmem:[#allocation7 + $0xa8] ss:$16 sps:$4 sm:$0xff]   ;;  %v1762_v1 = vld [vmem:[#allocation8 + $0x104] ss:$8 sps:$4 sm:$0xff]  }
  0x98   :  { %653 = vmatpush1.bf16.msra.mxu0 %v1660_v41  ;;  %1139 = vmatpush1.bf16.msra.mxu1 %v1742_v3  ;;  %v1684_v41 = vld [vmem:[#allocation7 + $0xcc] ss:$16 sps:$4 sm:$0xff]   ;;  %v1809_v3 = vld [vmem:[#allocation10] sm:$0xff]  }
  0x99   :  { %654 = vmatprep.subr.bf16.mxu0 %v1661_v42  ;;  %1140 = vmatprep.subr.bf16.mxu1 %v1747_v4  ;;  %v1682_v42 = vld [vmem:[#allocation7 + $0xc8] ss:$16 sps:$4 sm:$0xff]  }
  0x9a   :  { %v1810_v4 = vld [vmem:[#allocation10 + $0x48] sm:$0xff]  }
  0x9c   :  { %655 = vmatpush1.bf16.msra.mxu0 %v1663_v43  ;;  %1141 = vmatpush1.bf16.msra.mxu1 %v1745_v6  ;;  %v1687_v43 = vld [vmem:[#allocation7 + $0xec] ss:$16 sps:$4 sm:$0xff]  }
  0x9d   :  { %667 = vmatprep.subr.bf16.mxu0 %v1666_v44  ;;  %1142 = vmatprep.subr.bf16.mxu1 %v1750_v7  ;;  %v1685_v44 = vld [vmem:[#allocation7 + $0xe8] ss:$16 sps:$4 sm:$0xff]   ;;  %v1812_v7 = vld [vmem:[#allocation10 + $0x50] sm:$0xff]  }
  0x9e   :  { %v1811_v6 = vld [vmem:[#allocation10 + $0x8] sm:$0xff]  }
  0xa0   :  { %1143 = vmatpush1.bf16.msra.mxu1 %v1748_v11  ;;  %v1814_v11 = vld [vmem:[#allocation10 + $0x58] sm:$0xff]  }
  0xa1   :  { %1144 = vmatprep.subr.bf16.mxu1 %v1753_v12  ;;  %v1815_v12 = vld [vmem:[#allocation10 + $0x18] sm:$0xff]  }
  0xa4   :  { %1145 = vmatpush1.bf16.msra.mxu1 %v1751_v15  ;;  %v1818_v15 = vld [vmem:[#allocation10 + $0x68] sm:$0xff]  }
  0xa5   :  { %1146 = vmatprep.subr.bf16.mxu1 %v1756_v61  ;;  %v1799_v61 = vld [vmem:[#allocation8 + $0x1d0] ss:$8 sps:$4 sm:$0xff]  }
  0xa8   :  { %1147 = vmatpush1.bf16.msra.mxu1 %v1754_v62 }
  0xa9   :  { %1148 = vmatprep.subr.bf16.mxu1 %v1759_v63  ;;  %v1804_v63 = vld [vmem:[#allocation8 + $0x1e4] ss:$8 sps:$4 sm:$0xff]  }
  0xac   :  { %1149 = vmatpush1.bf16.msra.mxu1 %v1757_v0 }
  0xad   :  { %1161 = vmatprep.subr.bf16.mxu1 %v1762_v1 }
 0x13f   :  { %v203_v16 = vpop.f32.mrb[0].mxu1 }
 0x140   :  { %v204_v17 = vadd.f32 %v203_v16, %v118_v13  ;;  %v205_v18 = vpop.f32.mrb[1].mxu1  ;;  %v2130_v16 = vld [vmem:[%s2167_s4] sm:$0xf] }
 0x141   :  { %v206_v19 = vadd.f32 %v205_v18, %v122_v14  ;;  %v207_v20 = vpop.f32.mrb[2].mxu1  ;;  %v291_v18 = vrot.slane %v2130_v16, %v2119_v10 }
 0x142   :  { %v208_v21 = vadd.f32 %v207_v20, %v118_v13  ;;  %v209_v22 = vpop.f32.mrb[3].mxu1  ;;  %v212_v24 = vmax.f32 %v204_v17, 0.0  ;;  %v1816_v13 = vld [vmem:[#allocation10 + $0x60] sm:$0xff]   ;;  %v287_v17 = vrot.slane %v2130_v16, %v2113_v8 }
 0x143   :  { %v210_v23 = vadd.f32 %v209_v22, %v122_v14  ;;  %v213_v26 = vmax.f32 %v206_v19, 0.0  ;;  %v1817_v14 = vld [vmem:[#allocation10 + $0x20] sm:$0xff]  }
 0x144   :  { %v214_v25 = vmax.f32 %v208_v21, 0.0 }
 0x145   :  { %v215_v27 = vmax.f32 %v210_v23, 0.0 }
 0x146   :  { %v2123_v28 = vpack.c.bf16 %v214_v25, %v212_v24 }
 0x147   :  { %v217_v29 = vpack.c.bf16 %v215_v27, %v213_v26 }
 0x149   :  { %656 = vmatprep.mubr.bf16.mxu0 %v217_v29 }
 0x14a   :  { %657 = vmatmul.mubr.bf16.vlgmr.msra.gmra.mrb[0].mxu0 %v2123_v28 }
 0x14b   :  { %668 = vmatpush1.bf16.msra.mxu0 %v1664_v30  ;;  %699 = vmatprep.mubr.bf16.mxu0 %v217_v29 }
 0x14c   :  { %669 = vmatprep.subr.bf16.mxu0 %v1669_v31 }
 0x14f   :  { %670 = vmatpush1.bf16.msra.mxu0 %v1667_v32 }
 0x150   :  { %671 = vmatprep.subr.bf16.mxu0 %v1672_v33  ;;  %v1760_v33 = vld [vmem:[#allocation8 + $0x100] ss:$8 sps:$4 sm:$0xff]  }
 0x153   :  { %672 = vmatpush1.bf16.msra.mxu0 %v1670_v34  ;;  %v1765_v34 = vld [vmem:[#allocation8 + $0x114] ss:$8 sps:$4 sm:$0xff]  }
 0x154   :  { %673 = vmatprep.subr.bf16.mxu0 %v1675_v35  ;;  %v1763_v35 = vld [vmem:[#allocation8 + $0x110] ss:$8 sps:$4 sm:$0xff]  }
 0x157   :  { %674 = vmatpush1.bf16.msra.mxu0 %v1673_v36  ;;  %v1768_v36 = vld [vmem:[#allocation8 + $0x124] ss:$8 sps:$4 sm:$0xff]  }
 0x158   :  { %675 = vmatprep.subr.bf16.mxu0 %v1678_v37  ;;  %v1766_v37 = vld [vmem:[#allocation8 + $0x120] ss:$8 sps:$4 sm:$0xff]  }
 0x15b   :  { %676 = vmatpush1.bf16.msra.mxu0 %v1676_v38  ;;  %v1771_v38 = vld [vmem:[#allocation8 + $0x134] ss:$8 sps:$4 sm:$0xff]  }
 0x15c   :  { %677 = vmatprep.subr.bf16.mxu0 %v1681_v39  ;;  %v1769_v39 = vld [vmem:[#allocation8 + $0x130] ss:$8 sps:$4 sm:$0xff]  }
 0x15f   :  { %678 = vmatpush1.bf16.msra.mxu0 %v1679_v40  ;;  %v1774_v40 = vld [vmem:[#allocation8 + $0x144] ss:$8 sps:$4 sm:$0xff]  }
 0x160   :  { %679 = vmatprep.subr.bf16.mxu0 %v1684_v41  ;;  %v1772_v41 = vld [vmem:[#allocation8 + $0x140] ss:$8 sps:$4 sm:$0xff]  }
 0x163   :  { %680 = vmatpush1.bf16.msra.mxu0 %v1682_v42  ;;  %v1777_v42 = vld [vmem:[#allocation8 + $0x154] ss:$8 sps:$4 sm:$0xff]  }
 0x164   :  { %681 = vmatprep.subr.bf16.mxu0 %v1687_v43  ;;  %v1775_v43 = vld [vmem:[#allocation8 + $0x150] ss:$8 sps:$4 sm:$0xff]  }
 0x167   :  { %682 = vmatpush1.bf16.msra.mxu0 %v1685_v44  ;;  %v1780_v44 = vld [vmem:[#allocation8 + $0x164] ss:$8 sps:$4 sm:$0xff]  }
 0x168   :  { %683 = vmatprep.subr.bf16.mxu0 %v1690_v45  ;;  %v1778_v45 = vld [vmem:[#allocation8 + $0x160] ss:$8 sps:$4 sm:$0xff]  }
 0x16b   :  { %684 = vmatpush1.bf16.msra.mxu0 %v1688_v46  ;;  %v1783_v46 = vld [vmem:[#allocation8 + $0x174] ss:$8 sps:$4 sm:$0xff]  }
 0x16c   :  { %685 = vmatprep.subr.bf16.mxu0 %v1693_v47  ;;  %v1781_v47 = vld [vmem:[#allocation8 + $0x170] ss:$8 sps:$4 sm:$0xff]  }
 0x16f   :  { %686 = vmatpush1.bf16.msra.mxu0 %v1691_v48  ;;  %v1786_v48 = vld [vmem:[#allocation8 + $0x184] ss:$8 sps:$4 sm:$0xff]  }
 0x170   :  { %687 = vmatprep.subr.bf16.mxu0 %v1696_v49  ;;  %v1784_v49 = vld [vmem:[#allocation8 + $0x180] ss:$8 sps:$4 sm:$0xff]  }
 0x173   :  { %688 = vmatpush1.bf16.msra.mxu0 %v1694_v50  ;;  %v1789_v50 = vld [vmem:[#allocation8 + $0x194] ss:$8 sps:$4 sm:$0xff]  }
 0x174   :  { %689 = vmatprep.subr.bf16.mxu0 %v1699_v51  ;;  %v1787_v51 = vld [vmem:[#allocation8 + $0x190] ss:$8 sps:$4 sm:$0xff]  }
 0x177   :  { %690 = vmatpush1.bf16.msra.mxu0 %v1697_v52  ;;  %v1792_v52 = vld [vmem:[#allocation8 + $0x1a4] ss:$8 sps:$4 sm:$0xff]  }
 0x178   :  { %691 = vmatprep.subr.bf16.mxu0 %v1702_v53  ;;  %v1790_v53 = vld [vmem:[#allocation8 + $0x1a0] ss:$8 sps:$4 sm:$0xff]  }
 0x17b   :  { %692 = vmatpush1.bf16.msra.mxu0 %v1700_v54  ;;  %v1795_v54 = vld [vmem:[#allocation8 + $0x1b4] ss:$8 sps:$4 sm:$0xff]  }
 0x17c   :  { %693 = vmatprep.subr.bf16.mxu0 %v1705_v55  ;;  %v1793_v55 = vld [vmem:[#allocation8 + $0x1b0] ss:$8 sps:$4 sm:$0xff]  }
 0x17f   :  { %694 = vmatpush1.bf16.msra.mxu0 %v1703_v56  ;;  %v1798_v56 = vld [vmem:[#allocation8 + $0x1c4] ss:$8 sps:$4 sm:$0xff]  }
 0x180   :  { %695 = vmatprep.subr.bf16.mxu0 %v1708_v57  ;;  %v1796_v57 = vld [vmem:[#allocation8 + $0x1c0] ss:$8 sps:$4 sm:$0xff]  }
 0x183   :  { %696 = vmatpush1.bf16.msra.mxu0 %v1706_v58  ;;  %v1801_v58 = vld [vmem:[#allocation8 + $0x1d4] ss:$8 sps:$4 sm:$0xff]  }
 0x184   :  { %697 = vmatprep.subr.bf16.mxu0 %v1711_v59  ;;  %v294_v59 = vsub.s32 2, %v2110_v5 }
 0x186   :  { %v295_v62 = vrot.slane %v2130_v16, %v294_v59 }
 0x187   :  { %698 = vmatpush1.bf16.msra.mxu0 %v1709_v60  ;;  %v298_v60 = vsub.s32 3, %v2110_v5 }
 0x188   :  { %1561 = vmatprep.subr.bf16.mxu0 %v1808_v2  ;;  %v1802_v2 = vld [vmem:[#allocation8 + $0x1e0] ss:$8 sps:$4 sm:$0xff]  }
 0x189   :  { %v299_v0 = vrot.slane %v2130_v16, %v298_v60 }
 0x18a   :  { %700 = vmatmul.mubr.bf16.vlgmr.msra.gmra.mrb[4].mxu0 %v2123_v28 }
 0x18b   :  { %1562 = vmatpush3.bf16.msra.mxu0 %v1809_v3 }
 0x18c   :  { %1563 = vmatprep.subr.bf16.mxu0 %v1810_v4 }
 0x18f   :  { %1564 = vmatpush3.bf16.msra.mxu0 %v1811_v6  ;;  %v1807_v6 = vld [vmem:[#allocation8 + $0x1f4] ss:$8 sps:$4 sm:$0xff]  }
 0x190   :  { %1565 = vmatprep.subr.bf16.mxu0 %v1812_v7 }
 0x193   :  { %1566 = vmatpush3.bf16.msra.mxu0 %v1813_v9 }
 0x194   :  { %1567 = vmatprep.subr.bf16.mxu0 %v1814_v11 }
 0x197   :  { %1568 = vmatpush3.bf16.msra.mxu0 %v1815_v12 }
 0x198   :  { %1569 = vmatprep.subr.bf16.mxu0 %v1816_v13  ;;  %v1805_v13 = vld [vmem:[#allocation8 + $0x1f0] ss:$8 sps:$4 sm:$0xff]  }
 0x19b   :  { %1570 = vmatpush3.bf16.msra.mxu0 %v1817_v14 }
 0x19c   :  { %1571 = vmatprep.subr.bf16.mxu0 %v1818_v15 }
 0x21d   :  { %v658_v19 = vpop.f32.mrb[0].mxu0 }
 0x21e   :  { %v659_v20 = vadd.f32 %v658_v19, %v287_v17  ;;  %v660_v21 = vpop.f32.mrb[1].mxu0 }
 0x21f   :  { %v661_v22 = vadd.f32 %v660_v21, %v291_v18  ;;  %v662_v23 = vpop.f32.mrb[2].mxu0  ;;  %v1820_v21 = vld [vmem:[#allocation10 + $0x70] sm:$0xff]  }
 0x220   :  { %v663_v24 = vadd.f32 %v662_v23, %v287_v17  ;;  %v664_v25 = vpop.f32.mrb[3].mxu0  ;;  %v710_v27 = vmax.f32 %v659_v20, 0.0  ;;  %v1819_v20 = vld [vmem:[#allocation10 + $0x28] sm:$0xff]   ;;  %v1822_v23 = vld [vmem:[#allocation10 + $0x78] sm:$0xff]  }
 0x221   :  { %v665_v26 = vadd.f32 %v664_v25, %v291_v18  ;;  %v711_v29 = vmax.f32 %v661_v22, 0.0  ;;  %1572 = vmatpush3.bf16.msra.mxu0 %v1819_v20  ;;  %v1821_v22 = vld [vmem:[#allocation10 + $0x30] sm:$0xff]  }
 0x222   :  { %v714_v28 = vmax.f32 %v663_v24, 0.0  ;;  %1573 = vmatprep.subr.bf16.mxu0 %v1820_v21  ;;  %v1823_v24 = vld [vmem:[#allocation10 + $0x38] sm:$0xff]   ;;  %v786_v25 = vld [vmem:[%s2169_s6] sm:$0x3] }
 0x223   :  { %v715_v30 = vmax.f32 %v665_v26, 0.0  ;;  %v791_v26 = vrot.slane %v786_v25, %v2113_v8  ;;  %v1544_v8 = vld [vmem:[%s2171_s8] ss:$0 sm:$0xff] }
 0x224   :  { %v718_v31 = vpack.c.bf16 %v714_v28, %v710_v27  ;;  %v795_v27 = vrot.slane %v786_v25, %v2119_v10 }
 0x225   :  { %v719_v32 = vpack.c.bf16 %v715_v30, %v711_v29  ;;  %1574 = vmatpush3.bf16.msra.mxu0 %v1821_v22 }
 0x226   :  { %1575 = vmatprep.subr.bf16.mxu0 %v1822_v23 }
 0x227   :  { %1150 = vmatprep.mubr.bf16.mxu1 %v719_v32 }
 0x228   :  { %1151 = vmatmul.mubr.bf16.vlgmr.msra.gmra.mrb[4].mxu1 %v718_v31 }
 0x229   :  { %1162 = vmatpush1.bf16.msra.mxu1 %v1760_v33  ;;  %1576 = vmatpush3.bf16.msra.mxu0 %v1823_v24 }
 0x22a   :  { %1163 = vmatprep.subr.bf16.mxu1 %v1765_v34 }
 0x22d   :  { %1164 = vmatpush1.bf16.msra.mxu1 %v1763_v35 }
 0x22e   :  { %1165 = vmatprep.subr.bf16.mxu1 %v1768_v36 }
 0x231   :  { %1166 = vmatpush1.bf16.msra.mxu1 %v1766_v37 }
 0x232   :  { %1167 = vmatprep.subr.bf16.mxu1 %v1771_v38 }
 0x235   :  { %1168 = vmatpush1.bf16.msra.mxu1 %v1769_v39 }
 0x236   :  { %1169 = vmatprep.subr.bf16.mxu1 %v1774_v40 }
 0x239   :  { %1170 = vmatpush1.bf16.msra.mxu1 %v1772_v41 }
 0x23a   :  { %1171 = vmatprep.subr.bf16.mxu1 %v1777_v42 }
 0x23d   :  { %1172 = vmatpush1.bf16.msra.mxu1 %v1775_v43 }
 0x23e   :  { %1173 = vmatprep.subr.bf16.mxu1 %v1780_v44 }
 0x241   :  { %1174 = vmatpush1.bf16.msra.mxu1 %v1778_v45 }
 0x242   :  { %1175 = vmatprep.subr.bf16.mxu1 %v1783_v46 }
 0x245   :  { %1176 = vmatpush1.bf16.msra.mxu1 %v1781_v47 }
 0x246   :  { %1177 = vmatprep.subr.bf16.mxu1 %v1786_v48 }
 0x249   :  { %1178 = vmatpush1.bf16.msra.mxu1 %v1784_v49 }
 0x24a   :  { %1179 = vmatprep.subr.bf16.mxu1 %v1789_v50 }
 0x24d   :  { %1180 = vmatpush1.bf16.msra.mxu1 %v1787_v51 }
 0x24e   :  { %1181 = vmatprep.subr.bf16.mxu1 %v1792_v52 }
 0x251   :  { %1182 = vmatpush1.bf16.msra.mxu1 %v1790_v53 }
 0x252   :  { %1183 = vmatprep.subr.bf16.mxu1 %v1795_v54 }
 0x255   :  { %1184 = vmatpush1.bf16.msra.mxu1 %v1793_v55 }
 0x256   :  { %1185 = vmatprep.subr.bf16.mxu1 %v1798_v56 }
 0x259   :  { %1186 = vmatpush1.bf16.msra.mxu1 %v1796_v57 }
 0x25a   :  { %1187 = vmatprep.subr.bf16.mxu1 %v1801_v58 }
 0x25d   :  { %v701_v1 = vpop.f32.mrb[4].mxu0  ;;  %1188 = vmatpush1.bf16.msra.mxu1 %v1799_v61 }
 0x25e   :  { %v702_v3 = vadd.f32 %v701_v1, %v295_v62  ;;  %v703_v4 = vpop.f32.mrb[5].mxu0  ;;  %1189 = vmatprep.subr.bf16.mxu1 %v1804_v63 }
 0x25f   :  { %v704_v7 = vadd.f32 %v703_v4, %v299_v0  ;;  %v705_v9 = vpop.f32.mrb[6].mxu0 }
 0x260   :  { %v706_v11 = vadd.f32 %v705_v9, %v295_v62  ;;  %v707_v12 = vpop.f32.mrb[7].mxu0  ;;  %v712_v14 = vmax.f32 %v702_v3, 0.0 }
 0x261   :  { %v708_v5 = vadd.f32 %v707_v12, %v299_v0  ;;  %1190 = vmatpush1.bf16.msra.mxu1 %v1802_v2  ;;  %v713_v17 = vmax.f32 %v704_v7, 0.0 }
 0x262   :  { %v716_v15 = vmax.f32 %v706_v11, 0.0  ;;  %1191 = vmatprep.subr.bf16.mxu1 %v1807_v6 }
 0x263   :  { %v717_v18 = vmax.f32 %v708_v5, 0.0 }
 0x264   :  { %v720_v16 = vpack.c.bf16 %v716_v15, %v712_v14 }
 0x265   :  { %v721_v19 = vpack.c.bf16 %v717_v18, %v713_v17  ;;  %1192 = vmatpush1.bf16.msra.mxu1 %v1805_v13 }
 0x267   :  { %1193 = vmatprep.mubr.bf16.mxu1 %v721_v19 }
 0x268   :  { %1194 = vmatmul.mubr.bf16.vlgmr.msra.gmra.mrb[4].mxu1 %v720_v16 }
 0x33b   :  { %v1195_v28 = vpop.f32.mrb[4].mxu1 }
 0x33c   :  { %v1583_v29 = vadd.f32 %v1195_v28, %v791_v26  ;;  %v1197_v30 = vpop.f32.mrb[5].mxu1 }
 0x33d   :  { %v1584_v31 = vadd.f32 %v1197_v30, %v795_v27  ;;  %v1199_v32 = vpop.f32.mrb[6].mxu1 }
 0x33e   :  { %v1585_v33 = vadd.f32 %v1199_v32, %v791_v26  ;;  %v1201_v34 = vpop.f32.mrb[7].mxu1  ;;  %v1204_v36 = vmax.f32 %v1583_v29, 0.0 }
 0x33f   :  { %v1586_v35 = vadd.f32 %v1201_v34, %v795_v27  ;;  %v1205_v38 = vmax.f32 %v1584_v31, 0.0 }
 0x340   :  { %v1206_v37 = vmax.f32 %v1585_v33, 0.0 }
 0x341   :  { %v1207_v39 = vmax.f32 %v1586_v35, 0.0 }
 0x342   :  { %v1208_v40 = vpack.c.bf16 %v1206_v37, %v1204_v36 }
 0x343   :  { %v1209_v41 = vpack.c.bf16 %v1207_v39, %v1205_v38 }
 0x345   :  { %1377 = vmatprep.mubr.bf16.mxu0 %v1209_v41 }
 0x346   :  { %1378 = vmatmul.mubr.bf16.vlgmr.msra.gmra.mrb[8].mxu0 %v1208_v40 }
 0x419   :  { %v1577_v42 = vpop.f32.mrb[8].mxu0 }
 0x41a   :  { %v1578_v10 = vpop.f32.mrb[9].mxu0 }
 0x41b   :  { %v1579_v43 = vadd.f32 %v1578_v10, %v1577_v42  ;;  %v1580_v44 = vpop.f32.mrb[10].mxu0 }
 0x41c   :  { %v1581_v45 = vpop.f32.mrb[11].mxu0 }
 0x41d   :  { %v1380_v46 = vadd.f32 %v1579_v43, %v1544_v8  ;;  %v1582_v47 = vadd.f32 %v1581_v45, %v1580_v44 }
 0x41f   :  { %1386 = vst [vmem:[#allocation11] sm:$0xff] %v1380_v46  ;;  %v1383_v48 = vadd.f32 %v1582_v47, %v1544_v8 }
 0x421   :  { %1387 = vst [vmem:[#allocation11 + $0x8] sm:$0xff] %v1383_v48 }
 0x422   :  { %1945 = shalt.err (!%p1942_p2)
}
 0x423   :  { %s1946_s18 = scalar_lea.hbm %s2172_s9, 256 }
 0x424   :  { %p1947_p3 = scmp.ne.s32.totalorder %s2172_s9, %s1946_s18  ;;  %p1950_p4 = scmp.lt.u32.totalorder %s1946_s18, %s2172_s9 }
 0x426   :  { %p1952_p5 = pnand %p1950_p4, %p1947_p3 }
 0x428   :  { %1955 = shalt.err (!%p1952_p5)
}
 0x429   :  { %1399 = dma.vmem_to_hbm [thread:$0]  %s1394_s0, 256, %s2172_s9, [#allocation4], %s1966_s21, %s1966_s21, %s1967_s22  }
 0x42a   :  { %1962 = dma.done.wait [#allocation4], 256  }
 0x42b   :  { %1963 = vsyncadd [#allocation4], 4294967040 }
 0x42c   :  { %1403 = vsyncpa [#allocation3], 1 }
 0x42d   :  { %1404 = vsyncpa [#allocation6], 1 }
 0x42e   :  { %1405 = vsyncpa [#allocation9], 1 }
 0x42f   :  { %1406 = vsyncpa [#allocation4], 1 }

</bundles_post_ra>
